<compile_context>
chip_gen: v5e
topology: v5e:2x2
jax: 0.10.0
libtpu: 0.0.40
codegen_flags: <defaults>
</compile_context>

<pallas_src>
import functools
import math

import jax
import jax.numpy as jnp
from jax.experimental import pallas as pl
from jax.experimental.pallas import tpu as pltpu

_LANE = 128


def _round_up(n, m):
    return ((n + m - 1) // m) * m


def _act_fn(non_linearity):
    if non_linearity == "tanh":
        return jnp.tanh
    if non_linearity == "relu":
        return lambda v: jnp.maximum(v, 0.0)
    raise ValueError("Unsupported non_linearity!")


def _make_mlp_kernel(num_hidden, tb, non_linearity="tanh"):
    """Kernel over one (TB, D_pad) batch tile; whole layer stack per tile."""
    act = _act_fn(non_linearity)

    def kernel(*refs):
        # refs = (x, [w0, b0, ..., w_{H-1}, b_{H-1}], w_last_row, b_last, out)
        x_ref = refs[0]
        o_ref = refs[-1]
        b_last_ref = refs[-2]        # SMEM (1,) f32
        w_last_ref = refs[-3]        # VMEM (1, D_pad) f32

        h = x_ref[...]               # already stored in the MXU feed dtype
        for i in range(num_hidden):
            w_ref = refs[1 + 2 * i]  # (D_pad, D_pad), feed dtype
            b_ref = refs[2 + 2 * i]  # (1, D_pad), f32 (pre-cast at prep time)
            acc = jnp.dot(h, w_ref[...],
                          preferred_element_type=jnp.float32)       # MXU
            h = act(acc + b_ref[...])                                # VPU + EUP, f32
            if i + 1 < num_hidden:
                # Cast once, only when feeding the MXU again (halves inter-layer
                # activation traffic; removes the per-layer cast at loop top).
                h = h.astype(w_ref.dtype)

        # Final [D_pad, 1] linear as VPU multiply + lane reduction (frees MXU).
        y = jnp.sum(h * w_last_ref[...], axis=-1, keepdims=True)    # (TB, 1) f32
        y = act(y + b_last_ref[0])
        # Lane-dense store: broadcast across 128 lanes -> unmasked vst slab.
        o_ref[...] = jnp.broadcast_to(y, (tb, _LANE)).astype(o_ref.dtype)

    return kernel


def init_mlp_params(key, input_size, layers=1, dtype=jnp.float32):
    """Mirror nn.Linear default init (uniform +-1/sqrt(fan_in)); W stored as [in, out]."""
    params = []
    dims = [(input_size, input_size)] * (layers - 1) + [(input_size, 1)]
    for fan_in, fan_out in dims:
        key, kw, kb = jax.random.split(key, 3)
        bound = 1.0 / math.sqrt(fan_in)
        w = jax.random.uniform(kw, (fan_in, fan_out), dtype=dtype,
                               minval=-bound, maxval=bound)
        b = jax.random.uniform(kb, (fan_out,), dtype=dtype,
                               minval=-bound, maxval=bound)
        params.append((w, b))
    return params


def prepare_params(params, input_size, weight_dtype=jnp.bfloat16):
    """Pad params to D_pad = round_up(D, 128).

    Hidden weights -> weight_dtype (MXU feed); biases, final row and final bias
    -> f32 so the kernel never casts them.
    """
    d_pad = _round_up(input_size, _LANE)
    wd = jnp.dtype(weight_dtype)
    flat = []
    *hidden, (w_last, b_last) = params
    for w, b in hidden:
        wp = jnp.zeros((d_pad, d_pad), wd).at[: w.shape[0], : w.shape[1]].set(
            w.astype(wd))
        bp = jnp.zeros((1, d_pad), jnp.float32).at[0, : b.shape[0]].set(
            b.astype(jnp.float32))
        flat += [wp, bp]
    w_row = jnp.zeros((1, d_pad), jnp.float32).at[0, : w_last.shape[0]].set(
        w_last[:, 0].astype(jnp.float32))
    flat.append(w_row)
    flat.append(b_last.astype(jnp.float32).reshape((1,)))
    return tuple(flat), d_pad


@functools.partial(
    jax.jit,
    static_argnames=("num_hidden", "d_pad", "tile_batch", "non_linearity",
                     "single_buffer_weights", "vmem_limit"))
def _mlp_forward_padded(xp, flat_params, *, num_hidden, d_pad, tile_batch,
                        non_linearity, single_buffer_weights, vmem_limit):
    b_pad = xp.shape[0]
    grid = (b_pad // tile_batch,)

    if single_buffer_weights:
        # Constant index_map -> a single VMEM buffer is enough (halves the
        # resident-weight footprint; dominant allocation for large D).
        mat_spec = pl.BlockSpec((d_pad, d_pad), lambda i: (0, 0),
                                pipeline_mode=pl.Buffered(1))
        row_spec = pl.BlockSpec((1, d_pad), lambda i: (0, 0),
                                pipeline_mode=pl.Buffered(1))
    else:
        mat_spec = pl.BlockSpec((d_pad, d_pad), lambda i: (0, 0))
        row_spec = pl.BlockSpec((1, d_pad), lambda i: (0, 0))

    x_spec = pl.BlockSpec((tile_batch, d_pad), lambda i: (i, 0))
    smem_spec = pl.BlockSpec(memory_space=pltpu.SMEM)

    in_specs = [x_spec]
    for _ in range(num_hidden):
        in_specs += [mat_spec, row_spec]
    in_specs += [row_spec, smem_spec]

    out_spec = pl.BlockSpec((tile_batch, _LANE), lambda i: (i, 0))

    return pl.pallas_call(
        _make_mlp_kernel(num_hidden, tile_batch, non_linearity),
        out_shape=jax.ShapeDtypeStruct((b_pad, _LANE), xp.dtype),
        grid=grid,
        in_specs=in_specs,
        out_specs=out_spec,
        compiler_params=pltpu.CompilerParams(
            dimension_semantics=("parallel",),
            vmem_limit_bytes=vmem_limit,
        ),
    )(xp, *flat_params)


def _vmem_capacity_bytes():
    try:
        return int(pltpu.get_tpu_info().vmem_capacity_bytes)
    except Exception:
        return 64 << 20   # conservative (v7x-sized) fallback


def _default_tile_batch(batch, d_pad):
    # Small D -> HBM/overhead bound: bigger batch tiles amortize per-step cost.
    if d_pad <= 256:
        cap = 2048
    elif d_pad <= 1024:
        cap = 1024
    else:
        cap = 512
    b_ceil = _round_up(max(batch, 1), _LANE)
    tb = min(cap, b_ceil)
    # Keep >=2 grid steps when the batch allows it so the "parallel" batch axis
    # can actually be split across v7x's two TensorCores.
    if b_ceil >= 2 * _LANE and tb * 2 > b_ceil:
        tb = _round_up((b_ceil + 1) // 2, _LANE)
    return tb


def mlp_forward(x, params, *, weight_dtype=jnp.bfloat16, tile_batch=None,
                non_linearity="tanh"):
    """x: [B, D] -> [B, 1]; matches MLP.forward (eval mode, dropout p=0)."""
    batch, d = x.shape
    num_hidden = len(params) - 1
    feed_dtype = jnp.dtype(weight_dtype)
    flat, d_pad = prepare_params(params, d, weight_dtype=feed_dtype)

    if tile_batch is None:
        tile_batch = _default_tile_batch(batch, d_pad)
    else:
        tile_batch = _round_up(int(tile_batch), _LANE)   # (8,128) guard

    b_pad = _round_up(max(batch, 1), tile_batch)
    xp = jnp.zeros((b_pad, d_pad), feed_dtype).at[:batch, :d].set(
        x.astype(feed_dtype))

    # Generation-aware VMEM budget (v5e/v6e: 128 MiB, v7x: 64 MiB physical).
    cap = int(_vmem_capacity_bytes() * 0.85)
    fb = feed_dtype.itemsize
    w_resident = num_hidden * d_pad * d_pad * fb
    if w_resident > int(cap * 0.7):
        # TODO(synk): add a K-grid reduction axis (pl.when-guarded accumulator)
        # instead of fully resident weights for very large D / many layers.
        raise NotImplementedError(
            "Resident weights (%d MiB) exceed the VMEM budget (%d MiB); "
            "K-grid fallback not implemented." % (w_resident >> 20, cap >> 20))

    need = (2 * tile_batch * d_pad * fb               # x double buffer
            + 2 * tile_batch * _LANE * fb             # output slab double buffer
            + 2 * tile_batch * d_pad * 4              # in-kernel f32 activation temps
            + 2 * (w_resident                         # weights (2x if fallback path)
                   + num_hidden * d_pad * 4           # f32 biases
                   + d_pad * 4 + 4))                  # final f32 row + scalar
    vmem_limit = min(cap, max(int(need * 1.25) + (2 << 20), 32 << 20))

    kwargs = dict(num_hidden=num_hidden, d_pad=d_pad, tile_batch=tile_batch,
                  non_linearity=non_linearity, vmem_limit=vmem_limit)
    try:
        out = _mlp_forward_padded(xp, flat, single_buffer_weights=True, **kwargs)
    except Exception:
        # pl.Buffered(1) not accepted by this jax version: fall back to the
        # default double-buffered (still constant-index) resident specs.
        out = _mlp_forward_padded(xp, flat, single_buffer_weights=False, **kwargs)
    return out[:batch, :1].astype(x.dtype)


def mlp_reference(x, params):
    h = x.astype(jnp.float32)
    for w, b in params:
        h = jnp.tanh(jnp.dot(h, w, precision=jax.lax.Precision.HIGHEST) + b)
    return h.astype(x.dtype)


if __name__ == "__main__":
    key = jax.random.PRNGKey(0)
    batch, input_size, layers = 8, 32, 2

    kx, kp = jax.random.split(key)
    x = jax.random.normal(kx, (batch, input_size), dtype=jnp.float32)
    params = init_mlp_params(kp, input_size, layers=layers)

    y_ref = mlp_reference(x, params)

    # Exact-precision path (f32 weights) vs HIGHEST-precision reference.
    y32 = jax.block_until_ready(mlp_forward(x, params, weight_dtype=jnp.float32))
    assert y32.shape == (batch, 1), y32.shape
    assert jnp.allclose(y32, y_ref, atol=1e-4, rtol=1e-4), (
        "f32 mismatch vs reference, max abs err = %g"
        % float(jnp.max(jnp.abs(y32 - y_ref))))

    # Default perf path (bf16 MXU feed, f32 accumulate) with dtype-aware tolerance.
    y16 = jax.block_until_ready(mlp_forward(x, params))
    assert y16.shape == (batch, 1), y16.shape
    assert jnp.allclose(y16, y_ref, atol=3e-2, rtol=3e-2), (
        "bf16 mismatch vs reference, max abs err = %g"
        % float(jnp.max(jnp.abs(y16 - y_ref))))

    print("KERNEL_OK")
</pallas_src>

<mosaic_0001>
module attributes {stable_mosaic.version = 11 : i64} {
  func.func @kernel(%arg0: i32, %arg1: memref<128x128xf32, #tpu.memory_space<vmem>>, %arg2: memref<128x128xf32, #tpu.memory_space<vmem>>, %arg3: memref<1x128xf32, #tpu.memory_space<vmem>>, %arg4: memref<1x128xf32, #tpu.memory_space<vmem>>, %arg5: memref<1xf32, #tpu.memory_space<smem>>, %arg6: memref<128x128xf32, #tpu.memory_space<vmem>>) attributes {dimension_semantics = [#tpu.dimension_semantics<parallel>], iteration_bounds = array<i64: 1>, scalar_prefetch = 0 : i64, scratch_operands = 0 : i64, tpu.core_type = #tpu.core_type<tc>, window_params = [{transform_indices = @transform_0, window_bounds = array<i64: 128, 128>}, {pipeline_mode = #tpu.pipeline_mode<synchronous>, transform_indices = @transform_1, window_bounds = array<i64: 128, 128>}, {pipeline_mode = #tpu.pipeline_mode<synchronous>, transform_indices = @transform_2, window_bounds = array<i64: 1, 128>}, {pipeline_mode = #tpu.pipeline_mode<synchronous>, transform_indices = @transform_3, window_bounds = array<i64: 1, 128>}, {transform_indices = @transform_4, window_bounds = array<i64: 1>}, {transform_indices = @transform_5, window_bounds = array<i64: 128, 128>}]} {
    %c0 = arith.constant 0 : index
    %c0_0 = arith.constant 0 : index
    %0 = vector.load %arg1[%c0, %c0_0] : memref<128x128xf32, #tpu.memory_space<vmem>>, vector<128x128xf32>
    %c0_1 = arith.constant 0 : index
    %c0_2 = arith.constant 0 : index
    %1 = vector.load %arg2[%c0_1, %c0_2] : memref<128x128xf32, #tpu.memory_space<vmem>>, vector<128x128xf32>
    %cst = arith.constant dense<0.000000e+00> : vector<128x128xf32>
    %2 = tpu.matmul %0, %1, %cst {dimension_numbers = #tpu.dot_dimension_numbers<[1], [0], [0], [1], [0, 0, 1, 1], [], []>} : vector<128x128xf32>, vector<128x128xf32>, vector<128x128xf32> -> vector<128x128xf32>
    %c0_3 = arith.constant 0 : index
    %c0_4 = arith.constant 0 : index
    %3 = vector.load %arg3[%c0_3, %c0_4] : memref<1x128xf32, #tpu.memory_space<vmem>>, vector<1x128xf32>
    %4 = vector.broadcast %3 : vector<1x128xf32> to vector<128x128xf32>
    %5 = arith.addf %2, %4 : vector<128x128xf32>
    %6 = math.tanh %5 : vector<128x128xf32>
    %c0_5 = arith.constant 0 : index
    %c0_6 = arith.constant 0 : index
    %7 = vector.load %arg4[%c0_5, %c0_6] : memref<1x128xf32, #tpu.memory_space<vmem>>, vector<1x128xf32>
    %8 = vector.broadcast %7 : vector<1x128xf32> to vector<128x128xf32>
    %9 = arith.mulf %6, %8 : vector<128x128xf32>
    %cst_7 = arith.constant dense<0.000000e+00> : vector<128xf32>
    %10 = vector.multi_reduction <add>, %9, %cst_7 [1] : vector<128x128xf32> to vector<128xf32>
    %11 = vector.shape_cast %10 : vector<128xf32> to vector<128x1xf32>
    %c0_8 = arith.constant 0 : index
    %12 = memref.load %arg5[%c0_8] : memref<1xf32, #tpu.memory_space<smem>>
    %13 = vector.broadcast %12 : f32 to vector<128x1xf32>
    %14 = arith.addf %11, %13 : vector<128x1xf32>
    %15 = math.tanh %14 : vector<128x1xf32>
    %16 = vector.shape_cast %15 : vector<128x1xf32> to vector<128x1xf32>
    %17 = vector.broadcast %16 : vector<128x1xf32> to vector<128x128xf32>
    %c0_9 = arith.constant 0 : index
    %c0_10 = arith.constant 0 : index
    %18 = vector.load %arg6[%c0_9, %c0_10] : memref<128x128xf32, #tpu.memory_space<vmem>>, vector<128x128xf32>
    tpu.vector_store %arg6[%c0_9, %c0_10], %17 {strides = array<i32>} : memref<128x128xf32, #tpu.memory_space<vmem>>, vector<128x128xf32>,
    return
  }
  func.func @transform_0(%arg0: i32) -> (i32, i32) {
    %c0_i32 = arith.constant 0 : i32
    %c0_i32_0 = arith.constant 0 : i32
    return %arg0, %c0_i32 : i32, i32
  }
  func.func @transform_1(%arg0: i32) -> (i32, i32) {
    %c0_i32 = arith.constant 0 : i32
    %c0_i32_0 = arith.constant 0 : i32
    %c0_i32_1 = arith.constant 0 : i32
    return %c0_i32, %c0_i32_0 : i32, i32
  }
  func.func @transform_2(%arg0: i32) -> (i32, i32) {
    %c0_i32 = arith.constant 0 : i32
    %c0_i32_0 = arith.constant 0 : i32
    %c0_i32_1 = arith.constant 0 : i32
    return %c0_i32, %c0_i32_0 : i32, i32
  }
  func.func @transform_3(%arg0: i32) -> (i32, i32) {
    %c0_i32 = arith.constant 0 : i32
    %c0_i32_0 = arith.constant 0 : i32
    %c0_i32_1 = arith.constant 0 : i32
    return %c0_i32, %c0_i32_0 : i32, i32
  }
  func.func @transform_4(%arg0: i32) -> i32 {
    %c0_i32 = arith.constant 0 : i32
    %c0_i32_0 = arith.constant 0 : i32
    return %c0_i32 : i32
  }
  func.func @transform_5(%arg0: i32) -> (i32, i32) {
    %c0_i32 = arith.constant 0 : i32
    %c0_i32_0 = arith.constant 0 : i32
    return %arg0, %c0_i32 : i32, i32
  }
}

module attributes {stable_mosaic.version = 11 : i64} {
  func.func @kernel(%arg0: i32, %arg1: memref<128x128xf32, #tpu.memory_space<vmem>>, %arg2: memref<128x128xf32, #tpu.memory_space<vmem>>, %arg3: memref<1x128xf32, #tpu.memory_space<vmem>>, %arg4: memref<1x128xf32, #tpu.memory_space<vmem>>, %arg5: memref<1xf32, #tpu.memory_space<smem>>, %arg6: memref<128x128xf32, #tpu.memory_space<vmem>>) attributes {dimension_semantics = [#tpu.dimension_semantics<parallel>], iteration_bounds = array<i64: 1>, scalar_prefetch = 0 : i64, scratch_operands = 0 : i64, tpu.core_type = #tpu.core_type<tc>, window_params = [{transform_indices = @transform_0, window_bounds = array<i64: 128, 128>}, {pipeline_mode = #tpu.pipeline_mode<synchronous>, transform_indices = @transform_1, window_bounds = array<i64: 128, 128>}, {pipeline_mode = #tpu.pipeline_mode<synchronous>, transform_indices = @transform_2, window_bounds = array<i64: 1, 128>}, {pipeline_mode = #tpu.pipeline_mode<synchronous>, transform_indices = @transform_3, window_bounds = array<i64: 1, 128>}, {transform_indices = @transform_4, window_bounds = array<i64: 1>}, {transform_indices = @transform_5, window_bounds = array<i64: 128, 128>}]} {
    %c0 = arith.constant 0 : index
    %c0_0 = arith.constant 0 : index
    %0 = vector.load %arg1[%c0, %c0_0] : memref<128x128xf32, #tpu.memory_space<vmem>>, vector<128x128xf32>
    %c0_1 = arith.constant 0 : index
    %c0_2 = arith.constant 0 : index
    %1 = vector.load %arg2[%c0_1, %c0_2] : memref<128x128xf32, #tpu.memory_space<vmem>>, vector<128x128xf32>
    %cst = arith.constant dense<0.000000e+00> : vector<128x128xf32>
    %2 = tpu.matmul %0, %1, %cst {dimension_numbers = #tpu.dot_dimension_numbers<[1], [0], [0], [1], [0, 0, 1, 1], [], []>} : vector<128x128xf32>, vector<128x128xf32>, vector<128x128xf32> -> vector<128x128xf32>
    %c0_3 = arith.constant 0 : index
    %c0_4 = arith.constant 0 : index
    %3 = vector.load %arg3[%c0_3, %c0_4] : memref<1x128xf32, #tpu.memory_space<vmem>>, vector<1x128xf32>
    %4 = vector.broadcast %3 : vector<1x128xf32> to vector<128x128xf32>
    %5 = arith.addf %2, %4 : vector<128x128xf32>
    %6 = math.tanh %5 : vector<128x128xf32>
    %c0_5 = arith.constant 0 : index
    %c0_6 = arith.constant 0 : index
    %7 = vector.load %arg4[%c0_5, %c0_6] : memref<1x128xf32, #tpu.memory_space<vmem>>, vector<1x128xf32>
    %8 = vector.broadcast %7 : vector<1x128xf32> to vector<128x128xf32>
    %9 = arith.mulf %6, %8 : vector<128x128xf32>
    %cst_7 = arith.constant dense<0.000000e+00> : vector<128xf32>
    %10 = vector.multi_reduction <add>, %9, %cst_7 [1] : vector<128x128xf32> to vector<128xf32>
    %11 = vector.shape_cast %10 : vector<128xf32> to vector<128x1xf32>
    %c0_8 = arith.constant 0 : index
    %12 = memref.load %arg5[%c0_8] : memref<1xf32, #tpu.memory_space<smem>>
    %13 = vector.broadcast %12 : f32 to vector<128x1xf32>
    %14 = arith.addf %11, %13 : vector<128x1xf32>
    %15 = math.tanh %14 : vector<128x1xf32>
    %16 = vector.shape_cast %15 : vector<128x1xf32> to vector<128x1xf32>
    %17 = vector.broadcast %16 : vector<128x1xf32> to vector<128x128xf32>
    %c0_9 = arith.constant 0 : index
    %c0_10 = arith.constant 0 : index
    %18 = vector.load %arg6[%c0_9, %c0_10] : memref<128x128xf32, #tpu.memory_space<vmem>>, vector<128x128xf32>
    tpu.vector_store %arg6[%c0_9, %c0_10], %17 {strides = array<i32>} : memref<128x128xf32, #tpu.memory_space<vmem>>, vector<128x128xf32>,
    return
  }
  func.func @transform_0(%arg0: i32) -> (i32, i32) {
    %c0_i32 = arith.constant 0 : i32
    %c0_i32_0 = arith.constant 0 : i32
    return %arg0, %c0_i32 : i32, i32
  }
  func.func @transform_1(%arg0: i32) -> (i32, i32) {
    %c0_i32 = arith.constant 0 : i32
    %c0_i32_0 = arith.constant 0 : i32
    %c0_i32_1 = arith.constant 0 : i32
    return %c0_i32, %c0_i32_0 : i32, i32
  }
  func.func @transform_2(%arg0: i32) -> (i32, i32) {
    %c0_i32 = arith.constant 0 : i32
    %c0_i32_0 = arith.constant 0 : i32
    %c0_i32_1 = arith.constant 0 : i32
    return %c0_i32, %c0_i32_0 : i32, i32
  }
  func.func @transform_3(%arg0: i32) -> (i32, i32) {
    %c0_i32 = arith.constant 0 : i32
    %c0_i32_0 = arith.constant 0 : i32
    %c0_i32_1 = arith.constant 0 : i32
    return %c0_i32, %c0_i32_0 : i32, i32
  }
  func.func @transform_4(%arg0: i32) -> i32 {
    %c0_i32 = arith.constant 0 : i32
    %c0_i32_0 = arith.constant 0 : i32
    return %c0_i32 : i32
  }
  func.func @transform_5(%arg0: i32) -> (i32, i32) {
    %c0_i32 = arith.constant 0 : i32
    %c0_i32_0 = arith.constant 0 : i32
    return %arg0, %c0_i32 : i32, i32
  }
}

</mosaic_0001>

<bundles_post_ra>
// kernel: _mlp_forward_padded.1
= control target key start
LH: loop header
LB: loop body
LE: loop exit
PB: predicated region body
PF: predicated region fallthrough
CT: control target
= control target key end

     0   :  { %11 = vsyncpa [#allocation4], 0  ;;  %s606_s0 = inlined_call_operand.hbm [shape: f32[128,128], index: 0, kind: input, shape index: {}]   ;;  %s607_s1 = inlined_call_operand.hbm [shape: f32[128,128], index: 1, kind: input, shape index: {}]   ;;  %s608_s2 = inlined_call_operand.vmem [shape: f32[1,128], index: 2, kind: input, shape index: {}]   ;;  %s609_s3 = inlined_call_operand.vmem [shape: f32[1,128], index: 3, kind: input, shape index: {}]   ;;  %s610_s4 = inlined_call_operand.<no memory space> [shape: f32[1], index: 4, kind: input, shape index: {}]   ;;  %s611_s5 = inlined_call_operand.hbm [shape: f32[128,128], index: 5, kind: output, shape index: {}]  }
   0x1   :  { %12 = vsyncpa [#allocation7], 0 }
   0x2   :  { %13 = vsyncpa [#allocation5], 0  ;;  %s18_s20 = sshll.u32 %s606_s0, 4  ;;  %s490_s21 = smov [#allocation3]   ;;  %s19_s20 = int_to_ptr.hbm [resolvable:$true] %s18_s20 }
   0x3   :  { %s20_s22 = sshll.u32 %s490_s21, 4  ;;  %s31_s25 = sshll.u32 %s607_s1, 4  ;;  %s21_s22 = int_to_ptr.vmem [resolvable:$true] %s20_s22  ;;  %s32_s25 = int_to_ptr.hbm [resolvable:$true] %s31_s25 }
   0x4   :  { %s491_s26 = smov 128   ;;  %s492_s27 = smov 8  }
   0x5   :  { %26 = dma.hbm_to_vmem [thread:$0]  %s19_s20, 2048, %s21_s22, [#allocation4], %s491_s26, %s491_s26, %s492_s27  }
   0x6   :  { %s493_s28 = smov [#allocation6]  }
   0x7   :  { %s33_s29 = sshll.u32 %s493_s28, 4  ;;  %s34_s29 = int_to_ptr.vmem [resolvable:$true] %s33_s29 }
   0x8   :  { %39 = dma.hbm_to_vmem [thread:$0]  %s32_s25, 2048, %s34_s29, [#allocation7], %s491_s26, %s491_s26, %s492_s27  }
   0x9   :  { %484 = dma.done.wait [#allocation4], 2048  }
   0xa   :  { %485 = vsyncadd [#allocation4], 4294965248 }
   0xb   :  { %486 = dma.done.wait [#allocation7], 2048  }
   0xc   :  { %487 = vsyncadd [#allocation7], 4294965248  ;;  %v85_v0 = vld [vmem:[#allocation6 + $0x78] sm:$0xff]  ;;  %v84_v1 = vld [vmem:[#allocation6 + $0x70] sm:$0xff]  ;;  %s279_s10 = sshll.u32 %s611_s5, 4  ;;  %s280_s10 = int_to_ptr.hbm [resolvable:$true] %s279_s10 }
   0xd   :  { %90 = vmatpush.msra.mxu0 %v85_v0  ;;  %293 = vmatpush.msra.mxu1 %v85_v0  ;;  %v83_v2 = vld [vmem:[#allocation6 + $0x68] sm:$0xff]  ;;  %v82_v3 = vld [vmem:[#allocation6 + $0x60] sm:$0xff]  ;;  %v81_v4 = vld [vmem:[#allocation6 + $0x58] sm:$0xff] }
   0xe   :  { %294 = vmatpush.msra.mxu2 %v85_v0  ;;  %295 = vmatpush.msra.mxu3 %v85_v0  ;;  %v80_v5 = vld [vmem:[#allocation6 + $0x50] sm:$0xff]  ;;  %v79_v6 = vld [vmem:[#allocation6 + $0x48] sm:$0xff]  ;;  %v78_v7 = vld [vmem:[#allocation6 + $0x40] sm:$0xff] }
   0xf   :  { %91 = vmatpush.msra.mxu0 %v84_v1  ;;  %296 = vmatpush.msra.mxu1 %v84_v1  ;;  %v77_v8 = vld [vmem:[#allocation6 + $0x38] sm:$0xff]  ;;  %v76_v9 = vld [vmem:[#allocation6 + $0x30] sm:$0xff]  ;;  %v75_v10 = vld [vmem:[#allocation6 + $0x28] sm:$0xff] }
  0x10   :  { %297 = vmatpush.msra.mxu2 %v84_v1  ;;  %298 = vmatpush.msra.mxu3 %v84_v1  ;;  %v74_v11 = vld [vmem:[#allocation6 + $0x20] sm:$0xff]  ;;  %v73_v12 = vld [vmem:[#allocation6 + $0x18] sm:$0xff]  ;;  %v72_v13 = vld [vmem:[#allocation6 + $0x10] sm:$0xff] }
  0x11   :  { %92 = vmatpush.msra.mxu0 %v83_v2  ;;  %299 = vmatpush.msra.mxu1 %v83_v2  ;;  %v71_v14 = vld [vmem:[#allocation6 + $0x8] sm:$0xff]  ;;  %v70_v15 = vld [vmem:[#allocation6] sm:$0xff]  ;;  %v56_v24 = vld [vmem:[#allocation3 + $0x10] sm:$0xff] }
  0x12   :  { %300 = vmatpush.msra.mxu2 %v83_v2  ;;  %301 = vmatpush.msra.mxu3 %v83_v2  ;;  %v54_v16 = vld [vmem:[#allocation3] sm:$0xff]  ;;  %v55_v20 = vld [vmem:[#allocation3 + $0x8] sm:$0xff]  ;;  %v60_v25 = vld [vmem:[#allocation3 + $0x30] sm:$0xff] }
  0x13   :  { %93 = vmatpush.msra.mxu0 %v82_v3  ;;  %302 = vmatpush.msra.mxu1 %v82_v3  ;;  %v58_v17 = vld [vmem:[#allocation3 + $0x20] sm:$0xff]  ;;  %v59_v21 = vld [vmem:[#allocation3 + $0x28] sm:$0xff]  ;;  %v64_v26 = vld [vmem:[#allocation3 + $0x50] sm:$0xff] }
  0x14   :  { %303 = vmatpush.msra.mxu2 %v82_v3  ;;  %304 = vmatpush.msra.mxu3 %v82_v3  ;;  %v62_v18 = vld [vmem:[#allocation3 + $0x40] sm:$0xff]  ;;  %v63_v22 = vld [vmem:[#allocation3 + $0x48] sm:$0xff]  ;;  %v68_v27 = vld [vmem:[#allocation3 + $0x70] sm:$0xff] }
  0x15   :  { %94 = vmatpush.msra.mxu0 %v81_v4  ;;  %305 = vmatpush.msra.mxu1 %v81_v4  ;;  %v66_v19 = vld [vmem:[#allocation3 + $0x60] sm:$0xff]  ;;  %v67_v23 = vld [vmem:[#allocation3 + $0x68] sm:$0xff]  ;;  %v57_v28 = vld [vmem:[#allocation3 + $0x18] sm:$0xff] }
  0x16   :  { %306 = vmatpush.msra.mxu2 %v81_v4  ;;  %307 = vmatpush.msra.mxu3 %v81_v4  ;;  %v61_v29 = vld [vmem:[#allocation3 + $0x38] sm:$0xff]  ;;  %v540_v32 = vld [vmem:[%s608_s2] ss:$0 sm:$0xff] }
  0x17   :  { %95 = vmatpush.msra.mxu0 %v80_v5  ;;  %308 = vmatpush.msra.mxu1 %v80_v5  ;;  %v65_v30 = vld [vmem:[#allocation3 + $0x58] sm:$0xff]  ;;  %v547_v37 = vld [vmem:[%s609_s3] ss:$0 sm:$0xff] }
  0x18   :  { %309 = vmatpush.msra.mxu2 %v80_v5  ;;  %310 = vmatpush.msra.mxu3 %v80_v5  ;;  %v69_v31 = vld [vmem:[#allocation3 + $0x78] sm:$0xff] }
  0x19   :  { %96 = vmatpush.msra.mxu0 %v79_v6  ;;  %311 = vmatpush.msra.mxu1 %v79_v6 }
  0x1a   :  { %312 = vmatpush.msra.mxu2 %v79_v6  ;;  %313 = vmatpush.msra.mxu3 %v79_v6 }
  0x1b   :  { %97 = vmatpush.msra.mxu0 %v78_v7  ;;  %314 = vmatpush.msra.mxu1 %v78_v7 }
  0x1c   :  { %315 = vmatpush.msra.mxu2 %v78_v7  ;;  %316 = vmatpush.msra.mxu3 %v78_v7 }
  0x1d   :  { %98 = vmatpush.msra.mxu0 %v77_v8  ;;  %317 = vmatpush.msra.mxu1 %v77_v8 }
  0x1e   :  { %318 = vmatpush.msra.mxu2 %v77_v8  ;;  %319 = vmatpush.msra.mxu3 %v77_v8 }
  0x1f   :  { %99 = vmatpush.msra.mxu0 %v76_v9  ;;  %320 = vmatpush.msra.mxu1 %v76_v9 }
  0x20   :  { %321 = vmatpush.msra.mxu2 %v76_v9  ;;  %322 = vmatpush.msra.mxu3 %v76_v9 }
  0x21   :  { %100 = vmatpush.msra.mxu0 %v75_v10  ;;  %323 = vmatpush.msra.mxu1 %v75_v10 }
  0x22   :  { %324 = vmatpush.msra.mxu2 %v75_v10  ;;  %325 = vmatpush.msra.mxu3 %v75_v10 }
  0x23   :  { %101 = vmatpush.msra.mxu0 %v74_v11  ;;  %326 = vmatpush.msra.mxu1 %v74_v11 }
  0x24   :  { %327 = vmatpush.msra.mxu2 %v74_v11  ;;  %328 = vmatpush.msra.mxu3 %v74_v11 }
  0x25   :  { %102 = vmatpush.msra.mxu0 %v73_v12  ;;  %329 = vmatpush.msra.mxu1 %v73_v12 }
  0x26   :  { %330 = vmatpush.msra.mxu2 %v73_v12  ;;  %331 = vmatpush.msra.mxu3 %v73_v12 }
  0x27   :  { %103 = vmatpush.msra.mxu0 %v72_v13  ;;  %332 = vmatpush.msra.mxu1 %v72_v13 }
  0x28   :  { %333 = vmatpush.msra.mxu2 %v72_v13  ;;  %334 = vmatpush.msra.mxu3 %v72_v13 }
  0x29   :  { %104 = vmatpush.msra.mxu0 %v71_v14  ;;  %335 = vmatpush.msra.mxu1 %v71_v14 }
  0x2a   :  { %336 = vmatpush.msra.mxu2 %v71_v14  ;;  %337 = vmatpush.msra.mxu3 %v71_v14 }
  0x2b   :  { %105 = vmatpush.msra.mxu0 %v70_v15  ;;  %338 = vmatpush.msra.mxu1 %v70_v15 }
  0x2c   :  { %106 = vmatmul.f32.vlgmr.msra.gmra.mxu0 %v54_v16  ;;  %118 = vmatmul.f32.vlgmr.msra.gmra.mxu1 %v58_v17 }
  0x2d   :  { %339 = vmatpush.msra.mxu2 %v70_v15  ;;  %340 = vmatpush.msra.mxu3 %v70_v15 }
  0x2e   :  { %130 = vmatmul.f32.vlgmr.msra.gmra.mxu2 %v62_v18  ;;  %142 = vmatmul.f32.vlgmr.msra.gmra.mxu3 %v66_v19 }
  0x34   :  { %109 = vmatmul.f32.gmra.mxu0 %v55_v20  ;;  %121 = vmatmul.f32.gmra.mxu1 %v59_v21 }
  0x36   :  { %133 = vmatmul.f32.gmra.mxu2 %v63_v22  ;;  %145 = vmatmul.f32.gmra.mxu3 %v67_v23 }
  0x3c   :  { %112 = vmatmul.f32.gmra.mxu0 %v56_v24  ;;  %124 = vmatmul.f32.gmra.mxu1 %v60_v25 }
  0x3e   :  { %136 = vmatmul.f32.gmra.mxu2 %v64_v26  ;;  %148 = vmatmul.f32.gmra.mxu3 %v68_v27 }
  0x44   :  { %115 = vmatmul.f32.gmra.mxu0 %v57_v28  ;;  %127 = vmatmul.f32.gmra.mxu1 %v61_v29 }
  0x46   :  { %139 = vmatmul.f32.gmra.mxu2 %v65_v30  ;;  %151 = vmatmul.f32.gmra.mxu3 %v69_v31 }
  0xa9   :  { %v107_v33 = vpop.f32.mrf.mxu0  ;;  %v119_v34 = vpop.f32.mrf.mxu1 }
  0xaa   :  { %v108_v35 = vadd.f32 %v540_v32, %v107_v33  ;;  %v120_v36 = vadd.f32 %v540_v32, %v119_v34 }
  0xac   :  { %348 = vtanh.f32 %v108_v35 }
  0xad   :  { %350 = vtanh.f32 %v120_v36 }
  0xb1   :  { %v110_v38 = vpop.f32.mrf.mxu0  ;;  %v131_v39 = vpop.f32.mrf.mxu2 }
  0xb2   :  { %v349_v40 = vpop.eup %348  ;;  %v132_v41 = vadd.f32 %v540_v32, %v131_v39  ;;  %v143_v42 = vpop.f32.mrf.mxu3  ;;  %v111_v49 = vadd.f32 %v540_v32, %v110_v38 }
  0xb3   :  { %v122_v43 = vpop.f32.mrf.mxu1  ;;  %v351_v44 = vpop.eup %350  ;;  %v144_v45 = vadd.f32 %v540_v32, %v143_v42  ;;  %v175_v46 = vmul.f32 %v349_v40, %v547_v37 }
  0xb4   :  { %v179_v47 = vmul.f32 %v351_v44, %v547_v37  ;;  %352 = vtanh.f32 %v132_v41  ;;  %v123_v48 = vadd.f32 %v540_v32, %v122_v43 }
  0xb5   :  { %191 = vadd.xlane.f32.xlu0 %v175_v46  ;;  %354 = vtanh.f32 %v144_v45 }
  0xb6   :  { %199 = vadd.xlane.f32.xlu2 %v179_v47  ;;  %356 = vtanh.f32 %v123_v48 }
  0xb7   :  { %358 = vtanh.f32 %v111_v49 }
  0xb9   :  { %v113_v50 = vpop.f32.mrf.mxu0  ;;  %v134_v51 = vpop.f32.mrf.mxu2 }
  0xba   :  { %v114_v52 = vadd.f32 %v540_v32, %v113_v50  ;;  %v146_v53 = vpop.f32.mrf.mxu3  ;;  %v353_v54 = vpop.eup %352  ;;  %v135_v60 = vadd.f32 %v540_v32, %v134_v51 }
  0xbb   :  { %v355_v55 = vpop.eup %354  ;;  %v183_v56 = vmul.f32 %v353_v54, %v547_v37  ;;  %v125_v58 = vpop.f32.mrf.mxu1  ;;  %v147_v27 = vadd.f32 %v540_v32, %v146_v53 }
  0xbc   :  { %360 = vtanh.f32 %v114_v52  ;;  %v187_v57 = vmul.f32 %v355_v55, %v547_v37  ;;  %v357_v59 = vpop.eup %356  ;;  %v126_v7 = vadd.f32 %v540_v32, %v125_v58 }
  0xbd   :  { %v359_v61 = vpop.eup %358  ;;  %v180_v2 = vmul.f32 %v357_v59, %v547_v37  ;;  %362 = vtanh.f32 %v135_v60 }
  0xbe   :  { %207 = vadd.xlane.f32.xlu2 %v183_v56  ;;  %215 = vadd.xlane.f32.xlu0 %v187_v57  ;;  %v176_v6 = vmul.f32 %v359_v61, %v547_v37 }
  0xc1   :  { %v137_v62 = vpop.f32.mrf.mxu2  ;;  %v116_v63 = vpop.f32.mrf.mxu0 }
  0xc2   :  { %v361_v0 = vpop.eup %360  ;;  %v138_v1 = vadd.f32 %v540_v32, %v137_v62  ;;  %v149_v3 = vpop.f32.mrf.mxu3  ;;  %v117_v5 = vadd.f32 %v540_v32, %v116_v63 }
  0xc3   :  { %v177_v4 = vmul.f32 %v361_v0, %v547_v37  ;;  %v128_v8 = vpop.f32.mrf.mxu1  ;;  %v363_v9 = vpop.eup %362  ;;  %v150_v16 = vadd.f32 %v540_v32, %v149_v3 }
  0xc4   :  { %364 = vtanh.f32 %v138_v1  ;;  %v129_v14 = vadd.f32 %v540_v32, %v128_v8  ;;  %v184_v17 = vmul.f32 %v363_v9, %v547_v37 }
  0xc5   :  { %195 = vadd.xlane.f32.xlu1 %v177_v4  ;;  %366 = vtanh.f32 %v117_v5 }
  0xc6   :  { %201 = vadd.xlane.f32.xlu2 %v180_v2  ;;  %193 = vadd.xlane.f32.xlu0 %v176_v6  ;;  %368 = vtanh.f32 %v126_v7 }
  0xc9   :  { %v140_v10 = vpop.f32.mrf.mxu2 }
  0xca   :  { %v365_v11 = vpop.eup %364  ;;  %v141_v12 = vadd.f32 %v540_v32, %v140_v10  ;;  %v152_v15 = vpop.f32.mrf.mxu3 }
  0xcb   :  { %v185_v13 = vmul.f32 %v365_v11, %v547_v37  ;;  %v367_v18 = vpop.eup %366  ;;  %v153_v19 = vadd.f32 %v540_v32, %v152_v15  ;;  %v582_v32 = vstv %s610_s4  ;;  %s494_s4 = smov [#allocation8]  }
  0xcc   :  { %370 = vtanh.f32 %v141_v12  ;;  %v369_v20 = vpop.eup %368  ;;  %v178_v21 = vmul.f32 %v367_v18, %v547_v37  ;;  %s277_s7 = sshll.u32 %s494_s4, 4  ;;  %s278_s7 = int_to_ptr.vmem [resolvable:$true] %s277_s7 }
  0xcd   :  { %211 = vadd.xlane.f32.xlu1 %v185_v13  ;;  %372 = vtanh.f32 %v129_v14  ;;  %v181_v24 = vmul.f32 %v369_v20, %v547_v37 }
  0xce   :  { %209 = vadd.xlane.f32.xlu0 %v184_v17  ;;  %374 = vtanh.f32 %v150_v16 }
  0xcf   :  { %376 = vtanh.f32 %v153_v19 }
  0xd0   :  { %378 = vtanh.f32 %v147_v27 }
  0xd2   :  { %v371_v22 = vpop.eup %370 }
  0xd3   :  { %v186_v23 = vmul.f32 %v371_v22, %v547_v37  ;;  %v373_v25 = vpop.eup %372 }
  0xd4   :  { %v375_v26 = vpop.eup %374  ;;  %v182_v30 = vmul.f32 %v373_v25, %v547_v37 }
  0xd5   :  { %213 = vadd.xlane.f32.xlu2 %v186_v23  ;;  %197 = vadd.xlane.f32.xlu1 %v178_v21  ;;  %v377_v28 = vpop.eup %376  ;;  %v189_v29 = vmul.f32 %v375_v26, %v547_v37 }
  0xd6   :  { %203 = vadd.xlane.f32.xlu0 %v181_v24  ;;  %v190_v31 = vmul.f32 %v377_v28, %v547_v37  ;;  %v379_v33 = vpop.eup %378 }
  0xd7   :  { %v188_v34 = vmul.f32 %v379_v33, %v547_v37 }
  0xdd   :  { %219 = vadd.xlane.f32.xlu2 %v189_v29  ;;  %205 = vadd.xlane.f32.xlu1 %v182_v30 }
  0xde   :  { %221 = vadd.xlane.f32.xlu0 %v190_v31 }
  0xe5   :  { %217 = vadd.xlane.f32.xlu1 %v188_v34 }
 0x128   :  { %v192_v35 = vpop.xlane.xlu0 %191 }
 0x129   :  { %v200_v36 = vpop.xlane.xlu2 %199  ;;  %v225_v38 = vadd.f32 %v582_v32, %v192_v35 }
 0x12a   :  { %v229_v39 = vadd.f32 %v582_v32, %v200_v36 }
 0x12b   :  { %380 = vtanh.f32 %v225_v38 }
 0x12c   :  { %382 = vtanh.f32 %v229_v39 }
 0x131   :  { %v381_v40 = vpop.eup %380  ;;  %v208_v41 = vpop.xlane.xlu2 %207 }
 0x132   :  { %v383_v42 = vpop.eup %382  ;;  %257 = vst [vmem:[#allocation8] sm:$0xff] %v381_v40  ;;  %v233_v37 = vadd.f32 %v582_v32, %v208_v41  ;;  %v216_v43 = vpop.xlane.xlu0 %215 }
 0x133   :  { %261 = vst [vmem:[#allocation8 + $0x20] sm:$0xff] %v383_v42  ;;  %v237_v44 = vadd.f32 %v582_v32, %v216_v43 }
 0x134   :  { %384 = vtanh.f32 %v233_v37 }
 0x135   :  { %386 = vtanh.f32 %v237_v44 }
 0x138   :  { %v196_v45 = vpop.xlane.xlu1 %195 }
 0x139   :  { %v227_v46 = vadd.f32 %v582_v32, %v196_v45  ;;  %v202_v47 = vpop.xlane.xlu2 %201 }
 0x13a   :  { %v385_v48 = vpop.eup %384  ;;  %v194_v49 = vpop.xlane.xlu0 %193  ;;  %v230_v50 = vadd.f32 %v582_v32, %v202_v47 }
 0x13b   :  { %v387_v51 = vpop.eup %386  ;;  %265 = vst [vmem:[#allocation8 + $0x40] sm:$0xff] %v385_v48  ;;  %388 = vtanh.f32 %v227_v46  ;;  %v226_v52 = vadd.f32 %v582_v32, %v194_v49 }
 0x13c   :  { %269 = vst [vmem:[#allocation8 + $0x60] sm:$0xff] %v387_v51  ;;  %390 = vtanh.f32 %v230_v50 }
 0x13d   :  { %392 = vtanh.f32 %v226_v52 }
 0x140   :  { %v212_v53 = vpop.xlane.xlu1 %211 }
 0x141   :  { %v389_v54 = vpop.eup %388  ;;  %v235_v55 = vadd.f32 %v582_v32, %v212_v53 }
 0x142   :  { %v391_v56 = vpop.eup %390  ;;  %259 = vst [vmem:[#allocation8 + $0x10] sm:$0xff] %v389_v54  ;;  %v210_v57 = vpop.xlane.xlu0 %209 }
 0x143   :  { %v393_v58 = vpop.eup %392  ;;  %262 = vst [vmem:[#allocation8 + $0x28] sm:$0xff] %v391_v56  ;;  %394 = vtanh.f32 %v235_v55  ;;  %v234_v59 = vadd.f32 %v582_v32, %v210_v57 }
 0x144   :  { %258 = vst [vmem:[#allocation8 + $0x8] sm:$0xff] %v393_v58 }
 0x145   :  { %396 = vtanh.f32 %v234_v59 }
 0x148   :  { %v214_v60 = vpop.xlane.xlu2 %213  ;;  %v198_v61 = vpop.xlane.xlu1 %197 }
 0x149   :  { %v395_v62 = vpop.eup %394  ;;  %v236_v63 = vadd.f32 %v582_v32, %v214_v60  ;;  %v228_v0 = vadd.f32 %v582_v32, %v198_v61 }
 0x14a   :  { %267 = vst [vmem:[#allocation8 + $0x50] sm:$0xff] %v395_v62  ;;  %v204_v1 = vpop.xlane.xlu0 %203 }
 0x14b   :  { %v397_v2 = vpop.eup %396  ;;  %398 = vtanh.f32 %v236_v63  ;;  %v231_v3 = vadd.f32 %v582_v32, %v204_v1 }
 0x14c   :  { %266 = vst [vmem:[#allocation8 + $0x48] sm:$0xff] %v397_v2  ;;  %400 = vtanh.f32 %v228_v0 }
 0x14d   :  { %402 = vtanh.f32 %v231_v3 }
 0x150   :  { %v220_v4 = vpop.xlane.xlu2 %219  ;;  %v206_v5 = vpop.xlane.xlu1 %205 }
 0x151   :  { %v399_v6 = vpop.eup %398  ;;  %v239_v7 = vadd.f32 %v582_v32, %v220_v4  ;;  %v232_v8 = vadd.f32 %v582_v32, %v206_v5 }
 0x152   :  { %v401_v9 = vpop.eup %400  ;;  %268 = vst [vmem:[#allocation8 + $0x58] sm:$0xff] %v399_v6  ;;  %v222_v10 = vpop.xlane.xlu0 %221 }
 0x153   :  { %v403_v11 = vpop.eup %402  ;;  %260 = vst [vmem:[#allocation8 + $0x18] sm:$0xff] %v401_v9  ;;  %404 = vtanh.f32 %v239_v7  ;;  %v240_v12 = vadd.f32 %v582_v32, %v222_v10 }
 0x154   :  { %263 = vst [vmem:[#allocation8 + $0x30] sm:$0xff] %v403_v11  ;;  %406 = vtanh.f32 %v232_v8 }
 0x155   :  { %408 = vtanh.f32 %v240_v12 }
 0x158   :  { %v218_v13 = vpop.xlane.xlu1 %217 }
 0x159   :  { %v405_v14 = vpop.eup %404  ;;  %v238_v15 = vadd.f32 %v582_v32, %v218_v13 }
 0x15a   :  { %v407_v16 = vpop.eup %406  ;;  %271 = vst [vmem:[#allocation8 + $0x70] sm:$0xff] %v405_v14 }
 0x15b   :  { %v409_v17 = vpop.eup %408  ;;  %264 = vst [vmem:[#allocation8 + $0x38] sm:$0xff] %v407_v16  ;;  %410 = vtanh.f32 %v238_v15 }
 0x15c   :  { %272 = vst [vmem:[#allocation8 + $0x78] sm:$0xff] %v409_v17 }
 0x161   :  { %v411_v18 = vpop.eup %410 }
 0x162   :  { %270 = vst [vmem:[#allocation8 + $0x68] sm:$0xff] %v411_v18 }
 0x163   :  { %285 = dma.vmem_to_hbm [thread:$0]  %s278_s7, 2048, %s280_s10, [#allocation5], %s491_s26, %s491_s26, %s492_s27  }
 0x164   :  { %488 = dma.done.wait [#allocation5], 2048  }
 0x165   :  { %489 = vsyncadd [#allocation5], 4294965248 }
 0x166   :  { %290 = vsyncpa [#allocation4], 1 }
 0x167   :  { %291 = vsyncpa [#allocation7], 1 }
 0x168   :  { %292 = vsyncpa [#allocation5], 1 }

// kernel: _mlp_forward_padded.1
= control target key start
LH: loop header
LB: loop body
LE: loop exit
PB: predicated region body
PF: predicated region fallthrough
CT: control target
= control target key end

     0   :  { %11 = vsyncpa [#allocation4], 0  ;;  %s606_s0 = inlined_call_operand.hbm [shape: f32[128,128], index: 0, kind: input, shape index: {}]   ;;  %s607_s1 = inlined_call_operand.hbm [shape: f32[128,128], index: 1, kind: input, shape index: {}]   ;;  %s608_s2 = inlined_call_operand.vmem [shape: f32[1,128], index: 2, kind: input, shape index: {}]   ;;  %s609_s3 = inlined_call_operand.vmem [shape: f32[1,128], index: 3, kind: input, shape index: {}]   ;;  %s610_s4 = inlined_call_operand.<no memory space> [shape: f32[1], index: 4, kind: input, shape index: {}]   ;;  %s611_s5 = inlined_call_operand.hbm [shape: f32[128,128], index: 5, kind: output, shape index: {}]  }
   0x1   :  { %12 = vsyncpa [#allocation7], 0 }
   0x2   :  { %13 = vsyncpa [#allocation5], 0  ;;  %s18_s20 = sshll.u32 %s606_s0, 4  ;;  %s490_s21 = smov [#allocation3]   ;;  %s19_s20 = int_to_ptr.hbm [resolvable:$true] %s18_s20 }
   0x3   :  { %s20_s22 = sshll.u32 %s490_s21, 4  ;;  %s31_s25 = sshll.u32 %s607_s1, 4  ;;  %s21_s22 = int_to_ptr.vmem [resolvable:$true] %s20_s22  ;;  %s32_s25 = int_to_ptr.hbm [resolvable:$true] %s31_s25 }
   0x4   :  { %s491_s26 = smov 128   ;;  %s492_s27 = smov 8  }
   0x5   :  { %26 = dma.hbm_to_vmem [thread:$0]  %s19_s20, 2048, %s21_s22, [#allocation4], %s491_s26, %s491_s26, %s492_s27  }
   0x6   :  { %s493_s28 = smov [#allocation6]  }
   0x7   :  { %s33_s29 = sshll.u32 %s493_s28, 4  ;;  %s34_s29 = int_to_ptr.vmem [resolvable:$true] %s33_s29 }
   0x8   :  { %39 = dma.hbm_to_vmem [thread:$0]  %s32_s25, 2048, %s34_s29, [#allocation7], %s491_s26, %s491_s26, %s492_s27  }
   0x9   :  { %484 = dma.done.wait [#allocation4], 2048  }
   0xa   :  { %485 = vsyncadd [#allocation4], 4294965248 }
   0xb   :  { %486 = dma.done.wait [#allocation7], 2048  }
   0xc   :  { %487 = vsyncadd [#allocation7], 4294965248  ;;  %v85_v0 = vld [vmem:[#allocation6 + $0x78] sm:$0xff]  ;;  %v84_v1 = vld [vmem:[#allocation6 + $0x70] sm:$0xff]  ;;  %s279_s10 = sshll.u32 %s611_s5, 4  ;;  %s280_s10 = int_to_ptr.hbm [resolvable:$true] %s279_s10 }
   0xd   :  { %90 = vmatpush.msra.mxu0 %v85_v0  ;;  %293 = vmatpush.msra.mxu1 %v85_v0  ;;  %v83_v2 = vld [vmem:[#allocation6 + $0x68] sm:$0xff]  ;;  %v82_v3 = vld [vmem:[#allocation6 + $0x60] sm:$0xff]  ;;  %v81_v4 = vld [vmem:[#allocation6 + $0x58] sm:$0xff] }
   0xe   :  { %294 = vmatpush.msra.mxu2 %v85_v0  ;;  %295 = vmatpush.msra.mxu3 %v85_v0  ;;  %v80_v5 = vld [vmem:[#allocation6 + $0x50] sm:$0xff]  ;;  %v79_v6 = vld [vmem:[#allocation6 + $0x48] sm:$0xff]  ;;  %v78_v7 = vld [vmem:[#allocation6 + $0x40] sm:$0xff] }
   0xf   :  { %91 = vmatpush.msra.mxu0 %v84_v1  ;;  %296 = vmatpush.msra.mxu1 %v84_v1  ;;  %v77_v8 = vld [vmem:[#allocation6 + $0x38] sm:$0xff]  ;;  %v76_v9 = vld [vmem:[#allocation6 + $0x30] sm:$0xff]  ;;  %v75_v10 = vld [vmem:[#allocation6 + $0x28] sm:$0xff] }
  0x10   :  { %297 = vmatpush.msra.mxu2 %v84_v1  ;;  %298 = vmatpush.msra.mxu3 %v84_v1  ;;  %v74_v11 = vld [vmem:[#allocation6 + $0x20] sm:$0xff]  ;;  %v73_v12 = vld [vmem:[#allocation6 + $0x18] sm:$0xff]  ;;  %v72_v13 = vld [vmem:[#allocation6 + $0x10] sm:$0xff] }
  0x11   :  { %92 = vmatpush.msra.mxu0 %v83_v2  ;;  %299 = vmatpush.msra.mxu1 %v83_v2  ;;  %v71_v14 = vld [vmem:[#allocation6 + $0x8] sm:$0xff]  ;;  %v70_v15 = vld [vmem:[#allocation6] sm:$0xff]  ;;  %v56_v24 = vld [vmem:[#allocation3 + $0x10] sm:$0xff] }
  0x12   :  { %300 = vmatpush.msra.mxu2 %v83_v2  ;;  %301 = vmatpush.msra.mxu3 %v83_v2  ;;  %v54_v16 = vld [vmem:[#allocation3] sm:$0xff]  ;;  %v55_v20 = vld [vmem:[#allocation3 + $0x8] sm:$0xff]  ;;  %v60_v25 = vld [vmem:[#allocation3 + $0x30] sm:$0xff] }
  0x13   :  { %93 = vmatpush.msra.mxu0 %v82_v3  ;;  %302 = vmatpush.msra.mxu1 %v82_v3  ;;  %v58_v17 = vld [vmem:[#allocation3 + $0x20] sm:$0xff]  ;;  %v59_v21 = vld [vmem:[#allocation3 + $0x28] sm:$0xff]  ;;  %v64_v26 = vld [vmem:[#allocation3 + $0x50] sm:$0xff] }
  0x14   :  { %303 = vmatpush.msra.mxu2 %v82_v3  ;;  %304 = vmatpush.msra.mxu3 %v82_v3  ;;  %v62_v18 = vld [vmem:[#allocation3 + $0x40] sm:$0xff]  ;;  %v63_v22 = vld [vmem:[#allocation3 + $0x48] sm:$0xff]  ;;  %v68_v27 = vld [vmem:[#allocation3 + $0x70] sm:$0xff] }
  0x15   :  { %94 = vmatpush.msra.mxu0 %v81_v4  ;;  %305 = vmatpush.msra.mxu1 %v81_v4  ;;  %v66_v19 = vld [vmem:[#allocation3 + $0x60] sm:$0xff]  ;;  %v67_v23 = vld [vmem:[#allocation3 + $0x68] sm:$0xff]  ;;  %v57_v28 = vld [vmem:[#allocation3 + $0x18] sm:$0xff] }
  0x16   :  { %306 = vmatpush.msra.mxu2 %v81_v4  ;;  %307 = vmatpush.msra.mxu3 %v81_v4  ;;  %v61_v29 = vld [vmem:[#allocation3 + $0x38] sm:$0xff]  ;;  %v540_v32 = vld [vmem:[%s608_s2] ss:$0 sm:$0xff] }
  0x17   :  { %95 = vmatpush.msra.mxu0 %v80_v5  ;;  %308 = vmatpush.msra.mxu1 %v80_v5  ;;  %v65_v30 = vld [vmem:[#allocation3 + $0x58] sm:$0xff]  ;;  %v547_v37 = vld [vmem:[%s609_s3] ss:$0 sm:$0xff] }
  0x18   :  { %309 = vmatpush.msra.mxu2 %v80_v5  ;;  %310 = vmatpush.msra.mxu3 %v80_v5  ;;  %v69_v31 = vld [vmem:[#allocation3 + $0x78] sm:$0xff] }
  0x19   :  { %96 = vmatpush.msra.mxu0 %v79_v6  ;;  %311 = vmatpush.msra.mxu1 %v79_v6 }
  0x1a   :  { %312 = vmatpush.msra.mxu2 %v79_v6  ;;  %313 = vmatpush.msra.mxu3 %v79_v6 }
  0x1b   :  { %97 = vmatpush.msra.mxu0 %v78_v7  ;;  %314 = vmatpush.msra.mxu1 %v78_v7 }
  0x1c   :  { %315 = vmatpush.msra.mxu2 %v78_v7  ;;  %316 = vmatpush.msra.mxu3 %v78_v7 }
  0x1d   :  { %98 = vmatpush.msra.mxu0 %v77_v8  ;;  %317 = vmatpush.msra.mxu1 %v77_v8 }
  0x1e   :  { %318 = vmatpush.msra.mxu2 %v77_v8  ;;  %319 = vmatpush.msra.mxu3 %v77_v8 }
  0x1f   :  { %99 = vmatpush.msra.mxu0 %v76_v9  ;;  %320 = vmatpush.msra.mxu1 %v76_v9 }
  0x20   :  { %321 = vmatpush.msra.mxu2 %v76_v9  ;;  %322 = vmatpush.msra.mxu3 %v76_v9 }
  0x21   :  { %100 = vmatpush.msra.mxu0 %v75_v10  ;;  %323 = vmatpush.msra.mxu1 %v75_v10 }
  0x22   :  { %324 = vmatpush.msra.mxu2 %v75_v10  ;;  %325 = vmatpush.msra.mxu3 %v75_v10 }
  0x23   :  { %101 = vmatpush.msra.mxu0 %v74_v11  ;;  %326 = vmatpush.msra.mxu1 %v74_v11 }
  0x24   :  { %327 = vmatpush.msra.mxu2 %v74_v11  ;;  %328 = vmatpush.msra.mxu3 %v74_v11 }
  0x25   :  { %102 = vmatpush.msra.mxu0 %v73_v12  ;;  %329 = vmatpush.msra.mxu1 %v73_v12 }
  0x26   :  { %330 = vmatpush.msra.mxu2 %v73_v12  ;;  %331 = vmatpush.msra.mxu3 %v73_v12 }
  0x27   :  { %103 = vmatpush.msra.mxu0 %v72_v13  ;;  %332 = vmatpush.msra.mxu1 %v72_v13 }
  0x28   :  { %333 = vmatpush.msra.mxu2 %v72_v13  ;;  %334 = vmatpush.msra.mxu3 %v72_v13 }
  0x29   :  { %104 = vmatpush.msra.mxu0 %v71_v14  ;;  %335 = vmatpush.msra.mxu1 %v71_v14 }
  0x2a   :  { %336 = vmatpush.msra.mxu2 %v71_v14  ;;  %337 = vmatpush.msra.mxu3 %v71_v14 }
  0x2b   :  { %105 = vmatpush.msra.mxu0 %v70_v15  ;;  %338 = vmatpush.msra.mxu1 %v70_v15 }
  0x2c   :  { %106 = vmatmul.f32.vlgmr.msra.gmra.mxu0 %v54_v16  ;;  %118 = vmatmul.f32.vlgmr.msra.gmra.mxu1 %v58_v17 }
  0x2d   :  { %339 = vmatpush.msra.mxu2 %v70_v15  ;;  %340 = vmatpush.msra.mxu3 %v70_v15 }
  0x2e   :  { %130 = vmatmul.f32.vlgmr.msra.gmra.mxu2 %v62_v18  ;;  %142 = vmatmul.f32.vlgmr.msra.gmra.mxu3 %v66_v19 }
  0x34   :  { %109 = vmatmul.f32.gmra.mxu0 %v55_v20  ;;  %121 = vmatmul.f32.gmra.mxu1 %v59_v21 }
  0x36   :  { %133 = vmatmul.f32.gmra.mxu2 %v63_v22  ;;  %145 = vmatmul.f32.gmra.mxu3 %v67_v23 }
  0x3c   :  { %112 = vmatmul.f32.gmra.mxu0 %v56_v24  ;;  %124 = vmatmul.f32.gmra.mxu1 %v60_v25 }
  0x3e   :  { %136 = vmatmul.f32.gmra.mxu2 %v64_v26  ;;  %148 = vmatmul.f32.gmra.mxu3 %v68_v27 }
  0x44   :  { %115 = vmatmul.f32.gmra.mxu0 %v57_v28  ;;  %127 = vmatmul.f32.gmra.mxu1 %v61_v29 }
  0x46   :  { %139 = vmatmul.f32.gmra.mxu2 %v65_v30  ;;  %151 = vmatmul.f32.gmra.mxu3 %v69_v31 }
  0xa9   :  { %v107_v33 = vpop.f32.mrf.mxu0  ;;  %v119_v34 = vpop.f32.mrf.mxu1 }
  0xaa   :  { %v108_v35 = vadd.f32 %v540_v32, %v107_v33  ;;  %v120_v36 = vadd.f32 %v540_v32, %v119_v34 }
  0xac   :  { %348 = vtanh.f32 %v108_v35 }
  0xad   :  { %350 = vtanh.f32 %v120_v36 }
  0xb1   :  { %v110_v38 = vpop.f32.mrf.mxu0  ;;  %v131_v39 = vpop.f32.mrf.mxu2 }
  0xb2   :  { %v349_v40 = vpop.eup %348  ;;  %v132_v41 = vadd.f32 %v540_v32, %v131_v39  ;;  %v143_v42 = vpop.f32.mrf.mxu3  ;;  %v111_v49 = vadd.f32 %v540_v32, %v110_v38 }
  0xb3   :  { %v122_v43 = vpop.f32.mrf.mxu1  ;;  %v351_v44 = vpop.eup %350  ;;  %v144_v45 = vadd.f32 %v540_v32, %v143_v42  ;;  %v175_v46 = vmul.f32 %v349_v40, %v547_v37 }
  0xb4   :  { %v179_v47 = vmul.f32 %v351_v44, %v547_v37  ;;  %352 = vtanh.f32 %v132_v41  ;;  %v123_v48 = vadd.f32 %v540_v32, %v122_v43 }
  0xb5   :  { %191 = vadd.xlane.f32.xlu0 %v175_v46  ;;  %354 = vtanh.f32 %v144_v45 }
  0xb6   :  { %199 = vadd.xlane.f32.xlu2 %v179_v47  ;;  %356 = vtanh.f32 %v123_v48 }
  0xb7   :  { %358 = vtanh.f32 %v111_v49 }
  0xb9   :  { %v113_v50 = vpop.f32.mrf.mxu0  ;;  %v134_v51 = vpop.f32.mrf.mxu2 }
  0xba   :  { %v114_v52 = vadd.f32 %v540_v32, %v113_v50  ;;  %v146_v53 = vpop.f32.mrf.mxu3  ;;  %v353_v54 = vpop.eup %352  ;;  %v135_v60 = vadd.f32 %v540_v32, %v134_v51 }
  0xbb   :  { %v355_v55 = vpop.eup %354  ;;  %v183_v56 = vmul.f32 %v353_v54, %v547_v37  ;;  %v125_v58 = vpop.f32.mrf.mxu1  ;;  %v147_v27 = vadd.f32 %v540_v32, %v146_v53 }
  0xbc   :  { %360 = vtanh.f32 %v114_v52  ;;  %v187_v57 = vmul.f32 %v355_v55, %v547_v37  ;;  %v357_v59 = vpop.eup %356  ;;  %v126_v7 = vadd.f32 %v540_v32, %v125_v58 }
  0xbd   :  { %v359_v61 = vpop.eup %358  ;;  %v180_v2 = vmul.f32 %v357_v59, %v547_v37  ;;  %362 = vtanh.f32 %v135_v60 }
  0xbe   :  { %207 = vadd.xlane.f32.xlu2 %v183_v56  ;;  %215 = vadd.xlane.f32.xlu0 %v187_v57  ;;  %v176_v6 = vmul.f32 %v359_v61, %v547_v37 }
  0xc1   :  { %v137_v62 = vpop.f32.mrf.mxu2  ;;  %v116_v63 = vpop.f32.mrf.mxu0 }
  0xc2   :  { %v361_v0 = vpop.eup %360  ;;  %v138_v1 = vadd.f32 %v540_v32, %v137_v62  ;;  %v149_v3 = vpop.f32.mrf.mxu3  ;;  %v117_v5 = vadd.f32 %v540_v32, %v116_v63 }
  0xc3   :  { %v177_v4 = vmul.f32 %v361_v0, %v547_v37  ;;  %v128_v8 = vpop.f32.mrf.mxu1  ;;  %v363_v9 = vpop.eup %362  ;;  %v150_v16 = vadd.f32 %v540_v32, %v149_v3 }
  0xc4   :  { %364 = vtanh.f32 %v138_v1  ;;  %v129_v14 = vadd.f32 %v540_v32, %v128_v8  ;;  %v184_v17 = vmul.f32 %v363_v9, %v547_v37 }
  0xc5   :  { %195 = vadd.xlane.f32.xlu1 %v177_v4  ;;  %366 = vtanh.f32 %v117_v5 }
  0xc6   :  { %201 = vadd.xlane.f32.xlu2 %v180_v2  ;;  %193 = vadd.xlane.f32.xlu0 %v176_v6  ;;  %368 = vtanh.f32 %v126_v7 }
  0xc9   :  { %v140_v10 = vpop.f32.mrf.mxu2 }
  0xca   :  { %v365_v11 = vpop.eup %364  ;;  %v141_v12 = vadd.f32 %v540_v32, %v140_v10  ;;  %v152_v15 = vpop.f32.mrf.mxu3 }
  0xcb   :  { %v185_v13 = vmul.f32 %v365_v11, %v547_v37  ;;  %v367_v18 = vpop.eup %366  ;;  %v153_v19 = vadd.f32 %v540_v32, %v152_v15  ;;  %v582_v32 = vstv %s610_s4  ;;  %s494_s4 = smov [#allocation8]  }
  0xcc   :  { %370 = vtanh.f32 %v141_v12  ;;  %v369_v20 = vpop.eup %368  ;;  %v178_v21 = vmul.f32 %v367_v18, %v547_v37  ;;  %s277_s7 = sshll.u32 %s494_s4, 4  ;;  %s278_s7 = int_to_ptr.vmem [resolvable:$true] %s277_s7 }
  0xcd   :  { %211 = vadd.xlane.f32.xlu1 %v185_v13  ;;  %372 = vtanh.f32 %v129_v14  ;;  %v181_v24 = vmul.f32 %v369_v20, %v547_v37 }
  0xce   :  { %209 = vadd.xlane.f32.xlu0 %v184_v17  ;;  %374 = vtanh.f32 %v150_v16 }
  0xcf   :  { %376 = vtanh.f32 %v153_v19 }
  0xd0   :  { %378 = vtanh.f32 %v147_v27 }
  0xd2   :  { %v371_v22 = vpop.eup %370 }
  0xd3   :  { %v186_v23 = vmul.f32 %v371_v22, %v547_v37  ;;  %v373_v25 = vpop.eup %372 }
  0xd4   :  { %v375_v26 = vpop.eup %374  ;;  %v182_v30 = vmul.f32 %v373_v25, %v547_v37 }
  0xd5   :  { %213 = vadd.xlane.f32.xlu2 %v186_v23  ;;  %197 = vadd.xlane.f32.xlu1 %v178_v21  ;;  %v377_v28 = vpop.eup %376  ;;  %v189_v29 = vmul.f32 %v375_v26, %v547_v37 }
  0xd6   :  { %203 = vadd.xlane.f32.xlu0 %v181_v24  ;;  %v190_v31 = vmul.f32 %v377_v28, %v547_v37  ;;  %v379_v33 = vpop.eup %378 }
  0xd7   :  { %v188_v34 = vmul.f32 %v379_v33, %v547_v37 }
  0xdd   :  { %219 = vadd.xlane.f32.xlu2 %v189_v29  ;;  %205 = vadd.xlane.f32.xlu1 %v182_v30 }
  0xde   :  { %221 = vadd.xlane.f32.xlu0 %v190_v31 }
  0xe5   :  { %217 = vadd.xlane.f32.xlu1 %v188_v34 }
 0x128   :  { %v192_v35 = vpop.xlane.xlu0 %191 }
 0x129   :  { %v200_v36 = vpop.xlane.xlu2 %199  ;;  %v225_v38 = vadd.f32 %v582_v32, %v192_v35 }
 0x12a   :  { %v229_v39 = vadd.f32 %v582_v32, %v200_v36 }
 0x12b   :  { %380 = vtanh.f32 %v225_v38 }
 0x12c   :  { %382 = vtanh.f32 %v229_v39 }
 0x131   :  { %v381_v40 = vpop.eup %380  ;;  %v208_v41 = vpop.xlane.xlu2 %207 }
 0x132   :  { %v383_v42 = vpop.eup %382  ;;  %257 = vst [vmem:[#allocation8] sm:$0xff] %v381_v40  ;;  %v233_v37 = vadd.f32 %v582_v32, %v208_v41  ;;  %v216_v43 = vpop.xlane.xlu0 %215 }
 0x133   :  { %261 = vst [vmem:[#allocation8 + $0x20] sm:$0xff] %v383_v42  ;;  %v237_v44 = vadd.f32 %v582_v32, %v216_v43 }
 0x134   :  { %384 = vtanh.f32 %v233_v37 }
 0x135   :  { %386 = vtanh.f32 %v237_v44 }
 0x138   :  { %v196_v45 = vpop.xlane.xlu1 %195 }
 0x139   :  { %v227_v46 = vadd.f32 %v582_v32, %v196_v45  ;;  %v202_v47 = vpop.xlane.xlu2 %201 }
 0x13a   :  { %v385_v48 = vpop.eup %384  ;;  %v194_v49 = vpop.xlane.xlu0 %193  ;;  %v230_v50 = vadd.f32 %v582_v32, %v202_v47 }
 0x13b   :  { %v387_v51 = vpop.eup %386  ;;  %265 = vst [vmem:[#allocation8 + $0x40] sm:$0xff] %v385_v48  ;;  %388 = vtanh.f32 %v227_v46  ;;  %v226_v52 = vadd.f32 %v582_v32, %v194_v49 }
 0x13c   :  { %269 = vst [vmem:[#allocation8 + $0x60] sm:$0xff] %v387_v51  ;;  %390 = vtanh.f32 %v230_v50 }
 0x13d   :  { %392 = vtanh.f32 %v226_v52 }
 0x140   :  { %v212_v53 = vpop.xlane.xlu1 %211 }
 0x141   :  { %v389_v54 = vpop.eup %388  ;;  %v235_v55 = vadd.f32 %v582_v32, %v212_v53 }
 0x142   :  { %v391_v56 = vpop.eup %390  ;;  %259 = vst [vmem:[#allocation8 + $0x10] sm:$0xff] %v389_v54  ;;  %v210_v57 = vpop.xlane.xlu0 %209 }
 0x143   :  { %v393_v58 = vpop.eup %392  ;;  %262 = vst [vmem:[#allocation8 + $0x28] sm:$0xff] %v391_v56  ;;  %394 = vtanh.f32 %v235_v55  ;;  %v234_v59 = vadd.f32 %v582_v32, %v210_v57 }
 0x144   :  { %258 = vst [vmem:[#allocation8 + $0x8] sm:$0xff] %v393_v58 }
 0x145   :  { %396 = vtanh.f32 %v234_v59 }
 0x148   :  { %v214_v60 = vpop.xlane.xlu2 %213  ;;  %v198_v61 = vpop.xlane.xlu1 %197 }
 0x149   :  { %v395_v62 = vpop.eup %394  ;;  %v236_v63 = vadd.f32 %v582_v32, %v214_v60  ;;  %v228_v0 = vadd.f32 %v582_v32, %v198_v61 }
 0x14a   :  { %267 = vst [vmem:[#allocation8 + $0x50] sm:$0xff] %v395_v62  ;;  %v204_v1 = vpop.xlane.xlu0 %203 }
 0x14b   :  { %v397_v2 = vpop.eup %396  ;;  %398 = vtanh.f32 %v236_v63  ;;  %v231_v3 = vadd.f32 %v582_v32, %v204_v1 }
 0x14c   :  { %266 = vst [vmem:[#allocation8 + $0x48] sm:$0xff] %v397_v2  ;;  %400 = vtanh.f32 %v228_v0 }
 0x14d   :  { %402 = vtanh.f32 %v231_v3 }
 0x150   :  { %v220_v4 = vpop.xlane.xlu2 %219  ;;  %v206_v5 = vpop.xlane.xlu1 %205 }
 0x151   :  { %v399_v6 = vpop.eup %398  ;;  %v239_v7 = vadd.f32 %v582_v32, %v220_v4  ;;  %v232_v8 = vadd.f32 %v582_v32, %v206_v5 }
 0x152   :  { %v401_v9 = vpop.eup %400  ;;  %268 = vst [vmem:[#allocation8 + $0x58] sm:$0xff] %v399_v6  ;;  %v222_v10 = vpop.xlane.xlu0 %221 }
 0x153   :  { %v403_v11 = vpop.eup %402  ;;  %260 = vst [vmem:[#allocation8 + $0x18] sm:$0xff] %v401_v9  ;;  %404 = vtanh.f32 %v239_v7  ;;  %v240_v12 = vadd.f32 %v582_v32, %v222_v10 }
 0x154   :  { %263 = vst [vmem:[#allocation8 + $0x30] sm:$0xff] %v403_v11  ;;  %406 = vtanh.f32 %v232_v8 }
 0x155   :  { %408 = vtanh.f32 %v240_v12 }
 0x158   :  { %v218_v13 = vpop.xlane.xlu1 %217 }
 0x159   :  { %v405_v14 = vpop.eup %404  ;;  %v238_v15 = vadd.f32 %v582_v32, %v218_v13 }
 0x15a   :  { %v407_v16 = vpop.eup %406  ;;  %271 = vst [vmem:[#allocation8 + $0x70] sm:$0xff] %v405_v14 }
 0x15b   :  { %v409_v17 = vpop.eup %408  ;;  %264 = vst [vmem:[#allocation8 + $0x38] sm:$0xff] %v407_v16  ;;  %410 = vtanh.f32 %v238_v15 }
 0x15c   :  { %272 = vst [vmem:[#allocation8 + $0x78] sm:$0xff] %v409_v17 }
 0x161   :  { %v411_v18 = vpop.eup %410 }
 0x162   :  { %270 = vst [vmem:[#allocation8 + $0x68] sm:$0xff] %v411_v18 }
 0x163   :  { %285 = dma.vmem_to_hbm [thread:$0]  %s278_s7, 2048, %s280_s10, [#allocation5], %s491_s26, %s491_s26, %s492_s27  }
 0x164   :  { %488 = dma.done.wait [#allocation5], 2048  }
 0x165   :  { %489 = vsyncadd [#allocation5], 4294965248 }
 0x166   :  { %290 = vsyncpa [#allocation4], 1 }
 0x167   :  { %291 = vsyncpa [#allocation7], 1 }
 0x168   :  { %292 = vsyncpa [#allocation5], 1 }

</bundles_post_ra>
